<compile_context>
chip_gen: v6e
topology: v6e:2x2x1
jax: 0.10.0
libtpu: 0.0.40
codegen_flags: <defaults>
</compile_context>

<pallas_src>
import jax
import jax.numpy as jnp
from jax.experimental import pallas as pl
from jax.experimental.pallas import tpu as pltpu


def _round_up(n, m):
    return (n + m - 1) // m * m


def _f_kernel(xh_ref, w1_ref, b1_ref, w2_ref, b2_ref, o_ref):
    # First linear layer: single K=(Dx+Dh) matmul; t-term already folded into b1.
    z = jnp.dot(xh_ref[...], w1_ref[...],
                preferred_element_type=jnp.float32) + b1_ref[...]
    a = jnp.tanh(z)
    # Second linear layer (lane-dense, padded Dout).
    out = jnp.dot(a, w2_ref[...],
                  preferred_element_type=jnp.float32) + b2_ref[...]
    o_ref[...] = out.astype(o_ref.dtype)


def prepare_params(params, dx):
    """One-time parameter prep, hoisted out of the per-call path."""
    w1, b1, w2, b2 = params
    H = w1.shape[1]
    Dout = w2.shape[1]
    # cat([x, t_rep, h], 1) @ w1  ==  [x, h] @ w1_xh  +  t * w1_t
    w1_xh = jnp.concatenate([w1[:dx, :], w1[dx + 1:, :]], axis=0)   # (Dx+Dh, H)
    w1_t = w1[dx:dx + 1, :]                                         # (1, H)
    b1_r = b1.reshape(1, H)
    # Lane-dense output: pad Dout to a multiple of 128 with zero columns.
    Dout_pad = _round_up(Dout, 128)
    if Dout_pad != Dout:
        w2 = jnp.pad(w2, ((0, 0), (0, Dout_pad - Dout)))
        b2 = jnp.pad(b2, ((0, Dout_pad - Dout),))
    b2_r = b2.reshape(1, Dout_pad)
    return dict(w1_xh=w1_xh, w1_t=w1_t, b1=b1_r, w2=w2, b2=b2_r,
                H=H, Dout=Dout, Dout_pad=Dout_pad)


def f_forward(t, x, h, prepped, *, tb_max=512):
    """Pallas equivalent of _F.forward(t, h) with self.x = x, self.func = MLP."""
    B = h.shape[0]
    Dx = x.shape[1]
    Dh = h.shape[1]
    Din = Dx + Dh
    H = prepped["H"]
    Dout = prepped["Dout"]
    Dout_pad = prepped["Dout_pad"]

    # Fold the scalar-t contribution into the first-layer bias (O(H) JAX op).
    b1_eff = (prepped["b1"]
              + t.reshape(1, 1).astype(prepped["b1"].dtype) * prepped["w1_t"])

    # Fuse the dim=1 concat once wrapper-side -> one K=Din matmul in the kernel.
    xh = jnp.concatenate([x.astype(h.dtype), h], axis=1)

    # Batch tiling: TB multiple of 8, pad B up to a multiple of TB if needed.
    TB = min(tb_max, _round_up(B, 8))
    B_pad = _round_up(B, TB)
    if B_pad != B:
        xh = jnp.pad(xh, ((0, B_pad - B), (0, 0)))
    grid = (B_pad // TB,)

    cost = pl.CostEstimate(
        flops=2 * B_pad * (Din * H + H * Dout_pad),
        transcendentals=B_pad * H,
        bytes_accessed=4 * (B_pad * Din + B_pad * Dout_pad
                            + Din * H + H + H * Dout_pad + Dout_pad),
    )

    out = pl.pallas_call(
        _f_kernel,
        out_shape=jax.ShapeDtypeStruct((B_pad, Dout_pad), h.dtype),
        grid_spec=pltpu.PrefetchScalarGridSpec(
            num_scalar_prefetch=0,
            grid=grid,
            in_specs=[
                pl.BlockSpec((TB, Din), lambda i: (i, 0)),        # streamed xh
                pl.BlockSpec((Din, H), lambda i: (0, 0)),         # resident W1
                pl.BlockSpec((1, H), lambda i: (0, 0)),           # resident b1_eff
                pl.BlockSpec((H, Dout_pad), lambda i: (0, 0)),    # resident W2
                pl.BlockSpec((1, Dout_pad), lambda i: (0, 0)),    # resident b2
            ],
            out_specs=pl.BlockSpec((TB, Dout_pad), lambda i: (i, 0)),
        ),
        compiler_params=pltpu.CompilerParams(
            dimension_semantics=("parallel",),
        ),
        cost_estimate=cost,
    )(xh, prepped["w1_xh"], b1_eff, prepped["w2"], prepped["b2"])

    if B_pad != B or Dout_pad != Dout:
        out = out[:B, :Dout]
    return out


def _reference(t, x, h, params):
    w1, b1, w2, b2 = params
    B = h.shape[0]
    t_rep = jnp.broadcast_to(t.reshape(1, 1), (B, 1)).astype(h.dtype)
    x_ = jnp.concatenate([x, t_rep, h], axis=1)
    return jnp.tanh(x_ @ w1 + b1) @ w2 + b2


if __name__ == "__main__":
    key = jax.random.PRNGKey(0)
    k_x, k_h, k_t, k_w1, k_b1, k_w2, k_b2 = jax.random.split(key, 7)

    B, Dx, Dh, H, Dout = 8, 16, 32, 64, 32
    Din = Dx + 1 + Dh

    x = jax.random.normal(k_x, (B, Dx), dtype=jnp.float32)    # self.x
    h = jax.random.normal(k_h, (B, Dh), dtype=jnp.float32)
    t = jax.random.normal(k_t, (1,), dtype=jnp.float32)

    # Deterministic synthetic params: func = Linear(Din,H) -> tanh -> Linear(H,Dout)
    w1 = jax.random.normal(k_w1, (Din, H), dtype=jnp.float32) * 0.1
    b1 = jax.random.normal(k_b1, (H,), dtype=jnp.float32) * 0.1
    w2 = jax.random.normal(k_w2, (H, Dout), dtype=jnp.float32) * 0.1
    b2 = jax.random.normal(k_b2, (Dout,), dtype=jnp.float32) * 0.1
    params = (w1, b1, w2, b2)

    prepped = prepare_params(params, Dx)   # one-time prep (outside solver loop)
    out = f_forward(t, x, h, prepped)
    out = jax.block_until_ready(out)

    ref = _reference(t, x, h, params)
    assert out.shape == (B, Dout)
    assert jnp.allclose(out, ref, atol=1e-5, rtol=1e-5)
    print("KERNEL_OK")
</pallas_src>

<mosaic_0001>
module attributes {stable_mosaic.version = 11 : i64} {
  func.func @_f_kernel(%arg0: i32, %arg1: memref<8x48xf32, #tpu.memory_space<vmem>>, %arg2: memref<48x64xf32, #tpu.memory_space<vmem>>, %arg3: memref<1x64xf32, #tpu.memory_space<vmem>>, %arg4: memref<64x128xf32, #tpu.memory_space<vmem>>, %arg5: memref<1x128xf32, #tpu.memory_space<vmem>>, %arg6: memref<8x128xf32, #tpu.memory_space<vmem>>) attributes {dimension_semantics = [#tpu.dimension_semantics<parallel>], iteration_bounds = array<i64: 1>, scalar_prefetch = 0 : i64, scratch_operands = 0 : i64, tpu.core_type = #tpu.core_type<tc>, window_params = [{transform_indices = @transform_0, window_bounds = array<i64: 8, 48>}, {pipeline_mode = #tpu.pipeline_mode<synchronous>, transform_indices = @transform_1, window_bounds = array<i64: 48, 64>}, {pipeline_mode = #tpu.pipeline_mode<synchronous>, transform_indices = @transform_2, window_bounds = array<i64: 1, 64>}, {pipeline_mode = #tpu.pipeline_mode<synchronous>, transform_indices = @transform_3, window_bounds = array<i64: 64, 128>}, {pipeline_mode = #tpu.pipeline_mode<synchronous>, transform_indices = @transform_4, window_bounds = array<i64: 1, 128>}, {transform_indices = @transform_5, window_bounds = array<i64: 8, 128>}]} {
    %c0 = arith.constant 0 : index
    %c0_0 = arith.constant 0 : index
    %0 = vector.load %arg1[%c0, %c0_0] : memref<8x48xf32, #tpu.memory_space<vmem>>, vector<8x48xf32>
    %c0_1 = arith.constant 0 : index
    %c0_2 = arith.constant 0 : index
    %1 = vector.load %arg2[%c0_1, %c0_2] : memref<48x64xf32, #tpu.memory_space<vmem>>, vector<48x64xf32>
    %cst = arith.constant dense<0.000000e+00> : vector<8x64xf32>
    %2 = tpu.matmul %0, %1, %cst {dimension_numbers = #tpu.dot_dimension_numbers<[1], [0], [0], [1], [0, 0, 1, 1], [], []>} : vector<8x48xf32>, vector<48x64xf32>, vector<8x64xf32> -> vector<8x64xf32>
    %c0_3 = arith.constant 0 : index
    %c0_4 = arith.constant 0 : index
    %3 = vector.load %arg3[%c0_3, %c0_4] : memref<1x64xf32, #tpu.memory_space<vmem>>, vector<1x64xf32>
    %4 = vector.broadcast %3 : vector<1x64xf32> to vector<8x64xf32>
    %5 = arith.addf %2, %4 : vector<8x64xf32>
    %6 = math.tanh %5 : vector<8x64xf32>
    %c0_5 = arith.constant 0 : index
    %c0_6 = arith.constant 0 : index
    %7 = vector.load %arg4[%c0_5, %c0_6] : memref<64x128xf32, #tpu.memory_space<vmem>>, vector<64x128xf32>
    %cst_7 = arith.constant dense<0.000000e+00> : vector<8x128xf32>
    %8 = tpu.matmul %6, %7, %cst_7 {dimension_numbers = #tpu.dot_dimension_numbers<[1], [0], [0], [1], [0, 0, 1, 1], [], []>} : vector<8x64xf32>, vector<64x128xf32>, vector<8x128xf32> -> vector<8x128xf32>
    %c0_8 = arith.constant 0 : index
    %c0_9 = arith.constant 0 : index
    %9 = vector.load %arg5[%c0_8, %c0_9] : memref<1x128xf32, #tpu.memory_space<vmem>>, vector<1x128xf32>
    %10 = vector.broadcast %9 : vector<1x128xf32> to vector<8x128xf32>
    %11 = arith.addf %8, %10 : vector<8x128xf32>
    %c0_10 = arith.constant 0 : index
    %c0_11 = arith.constant 0 : index
    %12 = vector.load %arg6[%c0_10, %c0_11] : memref<8x128xf32, #tpu.memory_space<vmem>>, vector<8x128xf32>
    tpu.vector_store %arg6[%c0_10, %c0_11], %11 {strides = array<i32>} : memref<8x128xf32, #tpu.memory_space<vmem>>, vector<8x128xf32>,
    return
  }
  func.func @transform_0(%arg0: i32) -> (i32, i32) {
    %c0_i32 = arith.constant 0 : i32
    %c0_i32_0 = arith.constant 0 : i32
    return %arg0, %c0_i32 : i32, i32
  }
  func.func @transform_1(%arg0: i32) -> (i32, i32) {
    %c0_i32 = arith.constant 0 : i32
    %c0_i32_0 = arith.constant 0 : i32
    %c0_i32_1 = arith.constant 0 : i32
    return %c0_i32, %c0_i32_0 : i32, i32
  }
  func.func @transform_2(%arg0: i32) -> (i32, i32) {
    %c0_i32 = arith.constant 0 : i32
    %c0_i32_0 = arith.constant 0 : i32
    %c0_i32_1 = arith.constant 0 : i32
    return %c0_i32, %c0_i32_0 : i32, i32
  }
  func.func @transform_3(%arg0: i32) -> (i32, i32) {
    %c0_i32 = arith.constant 0 : i32
    %c0_i32_0 = arith.constant 0 : i32
    %c0_i32_1 = arith.constant 0 : i32
    return %c0_i32, %c0_i32_0 : i32, i32
  }
  func.func @transform_4(%arg0: i32) -> (i32, i32) {
    %c0_i32 = arith.constant 0 : i32
    %c0_i32_0 = arith.constant 0 : i32
    %c0_i32_1 = arith.constant 0 : i32
    return %c0_i32, %c0_i32_0 : i32, i32
  }
  func.func @transform_5(%arg0: i32) -> (i32, i32) {
    %c0_i32 = arith.constant 0 : i32
    %c0_i32_0 = arith.constant 0 : i32
    return %arg0, %c0_i32 : i32, i32
  }
}

</mosaic_0001>

<bundles_post_ra>
// kernel: tpu_custom_call.1
= control target key start
LH: loop header
LB: loop body
LE: loop exit
PB: predicated region body
PF: predicated region fallthrough
CT: control target
= control target key end

     0   :  { %10 = vsyncpa [#allocation3], 0  ;;  %s461_s0 = inlined_call_operand.hbm [shape: f32[8,48], index: 0, kind: input, shape index: {}]   ;;  %s462_s1 = inlined_call_operand.hbm [shape: f32[48,64], index: 1, kind: input, shape index: {}]   ;;  %s463_s2 = inlined_call_operand.vmem [shape: f32[1,64], index: 2, kind: input, shape index: {}]   ;;  %s464_s3 = inlined_call_operand.hbm [shape: f32[64,128], index: 3, kind: input, shape index: {}]   ;;  %s465_s4 = inlined_call_operand.vmem [shape: f32[1,128], index: 4, kind: input, shape index: {}]   ;;  %s466_s5 = inlined_call_operand.hbm [shape: f32[8,128], index: 5, kind: output, shape index: {}]  }
   0x1   :  { %11 = vsyncpa [#allocation6], 0 }
   0x2   :  { %12 = vsyncpa [#allocation4], 0  ;;  %s405_s18 = smov [#allocation5]  }
   0x3   :  { %s28_s19 = sshll.u32 %s405_s18, 4  ;;  %s29_s19 = int_to_ptr.vmem [resolvable:$true] %s28_s19 }
   0x4   :  { %s327_s20 = scalar_lea.vmem %s29_s19, 768  ;;  %p332_p1 = scmp.lt.s32.totalorder %s29_s19, %s29_s19 }
   0x5   :  { %p328_p0 = scmp.ne.s32.totalorder %s29_s19, %s327_s20  ;;  %p333_p2 = scmp.lt.s32.totalorder %s327_s20, %s327_s20 }
   0x7   :  { %p334_p3 = por %p333_p2, %p332_p1 }
   0x9   :  { %p335_p4 = pnand %p334_p3, %p328_p0 }
   0xb   :  { %338 = shalt.err (!%p335_p4)
}
   0xc   :  { %s406_s21 = smov 128   ;;  %s407_s22 = smov 8  }
   0xd   :  { %34 = dma.hbm_to_vmem [thread:$0]  %s462_s1, 768, %s29_s19, [#allocation6], %s406_s21, %s406_s21, %s407_s22  }
   0xe   :  { %s408_s25 = smov [#allocation2]   ;;  %s409_s27 = smov [#allocation7]  }
   0xf   :  { %s19_s26 = sshll.u32 %s408_s25, 4  ;;  %s42_s28 = sshll.u32 %s409_s27, 4  ;;  %s20_s26 = int_to_ptr.vmem [resolvable:$true] %s19_s26  ;;  %s43_s28 = int_to_ptr.vmem [resolvable:$true] %s42_s28 }
  0x10   :  { %s347_s29 = scalar_lea.vmem %s20_s26, 128  ;;  %p352_p6 = scmp.lt.s32.totalorder %s20_s26, %s20_s26 }
  0x11   :  { %p348_p5 = scmp.ne.s32.totalorder %s20_s26, %s347_s29  ;;  %p353_p7 = scmp.lt.s32.totalorder %s347_s29, %s347_s29 }
  0x13   :  { %p354_p8 = por %p353_p7, %p352_p6 }
  0x15   :  { %p355_p9 = pnand %p354_p8, %p348_p5 }
  0x17   :  { %358 = shalt.err (!%p355_p9)
}
  0x18   :  { %22 = dma.hbm_to_vmem [thread:$0]  %s461_s0, 128, %s20_s26, [#allocation3]  }
  0x19   :  { %s367_s7 = scalar_lea.vmem %s43_s28, 1024  ;;  %p372_p11 = scmp.lt.s32.totalorder %s43_s28, %s43_s28 }
  0x1a   :  { %p368_p10 = scmp.ne.s32.totalorder %s43_s28, %s367_s7  ;;  %p373_p12 = scmp.lt.s32.totalorder %s367_s7, %s367_s7 }
  0x1c   :  { %p374_p13 = por %p373_p12, %p372_p11 }
  0x1e   :  { %p375_p0 = pnand %p374_p13, %p368_p10 }
  0x20   :  { %378 = shalt.err (!%p375_p0)
}
  0x21   :  { %48 = dma.hbm_to_vmem [thread:$0]  %s464_s3, 1024, %s43_s28, [#allocation6], %s406_s21, %s406_s21, %s407_s22  }
  0x22   :  { %399 = dma.done.wait [#allocation3], 128  }
  0x23   :  { %400 = vsyncadd [#allocation3], 4294967168 }
  0x24   :  { %401 = dma.done.wait [#allocation6], 1792  }
  0x25   :  { %402 = vsyncadd [#allocation6], 4294965504  ;;  %v410_v0 = vmov 0.0   ;;  %vm411_vm0 = vmmov 0   ;;  %v66_v1 = vld [vmem:[#allocation5 + $0x28] sm:$0xff]  ;;  %v65_v2 = vld [vmem:[#allocation5 + $0x20] sm:$0xff] }
  0x26   :  { %275 = vmatprep.subr.mxu0 %v410_v0  ;;  %287 = vmatprep.mubr.msk.f32.mxu0 %vm411_vm0, %v410_v0  ;;  %v64_v3 = vld [vmem:[#allocation5 + $0x18] sm:$0xff]  ;;  %v63_v4 = vld [vmem:[#allocation5 + $0x10] sm:$0xff]  ;;  %v62_v5 = vld [vmem:[#allocation5 + $0x8] sm:$0xff]  ;;  %vm74_vm1 = vcmask 392192   ;;  %vm164_vm2 = vcmask 523264   ;;  %s412_s11 = smov [#allocation8]  }
  0x27   :  { %290 = vmatprep.subr.mxu1 %v410_v0  ;;  %306 = vmatprep.mubr.msk.f32.mxu1 %vm411_vm0, %v410_v0  ;;  %v61_v6 = vld [vmem:[#allocation5] sm:$0xff]  ;;  %v60_v7 = vld [vmem:[#allocation2] sm:$0xff]  ;;  %v156_v8 = vld [vmem:[#allocation7 + $0x38] sm:$0xff]  ;;  %s245_s12 = sshll.u32 %s412_s11, 4  ;;  %s246_s12 = int_to_ptr.vmem [resolvable:$true] %s245_s12 }
  0x28   :  { %276 = vmatpush3.msra.mxu0 %v66_v1  ;;  %291 = vmatpush3.msra.mxu1 %v156_v8  ;;  %v155_v9 = vld [vmem:[#allocation7 + $0x30] sm:$0xff]  ;;  %v154_v10 = vld [vmem:[#allocation7 + $0x28] sm:$0xff]  ;;  %v153_v11 = vld [vmem:[#allocation7 + $0x20] sm:$0xff]  ;;  %s379_s13 = scalar_lea.vmem %s246_s12, 128  ;;  %p384_p2 = scmp.lt.s32.totalorder %s246_s12, %s246_s12 }
  0x29   :  { %277 = vmatprep.subr.mxu0 %v410_v0  ;;  %292 = vmatprep.subr.mxu1 %v410_v0  ;;  %v152_v12 = vld [vmem:[#allocation7 + $0x18] sm:$0xff]  ;;  %v151_v13 = vld [vmem:[#allocation7 + $0x10] sm:$0xff]  ;;  %v150_v14 = vld [vmem:[#allocation7 + $0x8] sm:$0xff]  ;;  %p380_p1 = scmp.ne.s32.totalorder %s246_s12, %s379_s13  ;;  %p385_p3 = scmp.lt.s32.totalorder %s379_s13, %s379_s13 }
  0x2a   :  { %278 = vmatpush3.msra.mxu0 %v65_v2  ;;  %293 = vmatpush3.msra.mxu1 %v155_v9  ;;  %v149_v15 = vld [vmem:[#allocation7] sm:$0xff]  ;;  %v255_v16 = vld [vmem:[%s463_s2] ss:$0 sm:$0xff] }
  0x2b   :  { %279 = vmatprep.subr.mxu0 %v410_v0  ;;  %294 = vmatprep.subr.mxu1 %v410_v0  ;;  %v257_v21 = vld [vmem:[%s465_s4] ss:$0 sm:$0xff]  ;;  %p386_p4 = por %p385_p3, %p384_p2 }
  0x2c   :  { %280 = vmatpush3.msra.mxu0 %v64_v3  ;;  %295 = vmatpush3.msra.mxu1 %v154_v10 }
  0x2d   :  { %281 = vmatprep.subr.mxu0 %v410_v0  ;;  %296 = vmatprep.subr.mxu1 %v410_v0  ;;  %p387_p5 = pnand %p386_p4, %p380_p1 }
  0x2e   :  { %282 = vmatpush3.msra.mxu0 %v63_v4  ;;  %297 = vmatpush3.msra.mxu1 %v153_v11 }
  0x2f   :  { %283 = vmatprep.subr.mxu0 %v410_v0  ;;  %298 = vmatprep.subr.mxu1 %v410_v0 }
  0x30   :  { %284 = vmatpush3.msra.mxu0 %v62_v5  ;;  %299 = vmatpush3.msra.mxu1 %v152_v12 }
  0x31   :  { %285 = vmatprep.subr.mxu0 %v410_v0  ;;  %300 = vmatprep.subr.mxu1 %v410_v0 }
  0x32   :  { %286 = vmatpush3.msra.mxu0 %v61_v6  ;;  %301 = vmatpush3.msra.mxu1 %v151_v13 }
  0x33   :  { %288 = vmatmul.mubr.msk.f32.vlgmr.msra.gmra.mxu0 %vm74_vm1, %v60_v7  ;;  %302 = vmatprep.subr.mxu1 %v410_v0 }
  0x34   :  { %303 = vmatpush3.msra.mxu1 %v150_v14 }
  0x35   :  { %304 = vmatprep.subr.mxu1 %v410_v0 }
  0x36   :  { %305 = vmatpush3.msra.mxu1 %v149_v15 }
  0xf3   :  { %v144_v17 = vpop.f32.mrf.mxu0 }
  0xf4   :  { %v145_v18 = vadd.f32 %v255_v16, %v144_v17 }
  0xf5   :  { %v289_v19 = vpop.f32.mrf.mxu0 }
  0xf6   :  { %317 = vtanh.f32 %v145_v18 }
 0x103   :  { %v318_v20 = vpop.eup %317 }
 0x104   :  { %307 = vmatmul.mubr.msk.f32.vlgmr.msra.gmra.mxu1 %vm164_vm2, %v318_v20 }
 0x1c4   :  { %v234_v22 = vpop.f32.mrf.mxu1 }
 0x1c5   :  { %v235_v23 = vadd.f32 %v257_v21, %v234_v22 }
 0x1c6   :  { %v308_v24 = vpop.f32.mrf.mxu1 }
 0x1c7   :  { %238 = vst [vmem:[#allocation8] sm:$0xff] %v235_v23 }
 0x1c8   :  { %390 = shalt.err (!%p387_p5)
}
 0x1c9   :  { %248 = dma.vmem_to_hbm [thread:$0]  %s246_s12, 128, %s466_s5, [#allocation4]  }
 0x1ca   :  { %403 = dma.done.wait [#allocation4], 128  }
 0x1cb   :  { %404 = vsyncadd [#allocation4], 4294967168 }
 0x1cc   :  { %252 = vsyncpa [#allocation3], 1 }
 0x1cd   :  { %253 = vsyncpa [#allocation6], 1 }
 0x1ce   :  { %254 = vsyncpa [#allocation4], 1 }

</bundles_post_ra>
